<compile_context>
chip_gen: v7x
topology: tpu7x:2x2x1
jax: 0.10.0
libtpu: 0.0.40
codegen_flags: <defaults>
</compile_context>

<pallas_src>
import numpy as np
import jax
import jax.numpy as jnp
from jax.experimental import pallas as pl
from jax.experimental.pallas import tpu as pltpu

LN_EPS = 1e-5
GN_EPS = 1e-5
GROUPS = 8  # Attention_sa is constructed with groups=8 inside TransformerBlock_sa


# ----------------------------- Pallas kernel --------------------------------
def _block_kernel(x_ref, par_ref, perm_ref, o_ref):
    x = x_ref[0]                       # (C, HW): channels on sublanes, pixels on lanes
    par = par_ref[...]                 # (C, 5) packed per-channel params
    lnw, lnb = par[:, 0:1], par[:, 1:2]
    cw, gw, b1 = par[:, 2:3], par[:, 3:4], par[:, 4:5]

    # ---- channel LayerNorm (per pixel): sublane reduction, sum-of-squares var ----
    mu = jnp.mean(x, axis=0, keepdims=True)                       # (1, HW)
    var = jnp.mean(x * x, axis=0, keepdims=True) - mu * mu
    y = (x - mu) * jax.lax.rsqrt(var + LN_EPS) * lnw + lnb        # (C, HW)

    # ---- per-channel spatial stats (avg-pool / GroupNorm): lane reductions ----
    m = jnp.mean(y, axis=1, keepdims=True)                        # (C, 1)
    v = jnp.mean(y * y, axis=1, keepdims=True) - m * m
    gn = (y - m) * jax.lax.rsqrt(v + GN_EPS)                      # (C, HW)

    # folded gate pre-activation: x0 channels -> cw*m + b1 ; x1 channels -> gw*gn + b1
    pre = cw * m + gw * gn + b1                                   # (C, HW)
    attn = y * jax.nn.sigmoid(pre)

    # channel_shuffle folded into a one-hot permutation matmul on the (idle) MXU
    shuffled = jnp.dot(perm_ref[...], attn,
                       preferred_element_type=jnp.float32,
                       precision=jax.lax.Precision.HIGHEST)       # (C, HW)

    o_ref[0] = x + shuffled                                       # residual add


# ------------------------------ host-side prep -------------------------------
def _prepare_host_params(C, num_heads, params):
    """Build the one-hot shuffle matrix and the packed (C, 5) per-channel params."""
    Ch = C // num_heads          # channels per head
    Cg = Ch // GROUPS            # channels per group
    half = Cg // 2               # channels per x0 / x1 branch

    cweight = np.asarray(params["cweight"], np.float32).reshape(-1)
    cbias = np.asarray(params["cbias"], np.float32).reshape(-1)
    sweight = np.asarray(params["sweight"], np.float32).reshape(-1)
    sbias = np.asarray(params["sbias"], np.float32).reshape(-1)
    gnw = np.asarray(params["gn_w"], np.float32).reshape(-1)
    gnb = np.asarray(params["gn_b"], np.float32).reshape(-1)
    lnw = np.asarray(params["ln_w"], np.float32).reshape(-1)
    lnb = np.asarray(params["ln_b"], np.float32).reshape(-1)

    CW = np.zeros(C, np.float32)   # channel-attention weight   (x0 channels only)
    GW = np.zeros(C, np.float32)   # folded GN gain sw*gnw      (x1 channels only)
    B1 = np.zeros(C, np.float32)   # folded bias: cb (x0) or sw*gnb + sb (x1)
    for c in range(C):
        j = (c % Ch) % Cg
        if j < half:                       # x0 branch
            CW[c] = cweight[j]
            B1[c] = cbias[j]
        else:                              # x1 branch
            p = j - half
            GW[c] = sweight[p] * gnw[p]
            B1[c] = sweight[p] * gnb[p] + sbias[p]

    chan = np.stack([lnw, lnb, CW, GW, B1], axis=1).astype(np.float32)  # (C, 5)

    # channel_shuffle(groups=2) per head: output channel k <- pre-shuffle channel src[k]
    src = np.zeros(C, np.int64)
    for k in range(C):
        hd, kk = divmod(k, Ch)
        q, p = kk // 2, kk % 2
        src[k] = hd * Ch + p * (Ch // 2) + q
    P = np.zeros((C, C), np.float32)
    P[np.arange(C), src] = 1.0             # (P @ attn)[k, :] = attn[src[k], :]

    return jnp.asarray(P), jnp.asarray(chan)


def transformer_block_sa(x_nchw, params, num_heads):
    B, C, H, W = x_nchw.shape
    HW = H * W
    assert C % num_heads == 0 and (C // num_heads) % (2 * GROUPS) == 0

    x = x_nchw.reshape(B, C, HW).astype(jnp.float32)     # pure reshape, no transpose

    perm_mat, chan_params = _prepare_host_params(C, num_heads, params)

    x_spec = pl.BlockSpec((1, C, HW), lambda b: (b, 0, 0))
    par_spec = pl.BlockSpec((C, chan_params.shape[1]), lambda b: (0, 0))
    mat_spec = pl.BlockSpec((C, C), lambda b: (0, 0))

    # Raise the scoped VMEM limit only if the (double-buffered) per-batch block needs it.
    block_bytes = C * HW * 4
    need = 2 * 2 * block_bytes + (C * C + 8 * C) * 4 + (2 << 20)
    vmem_limit = int(min(need, 60 << 20)) if need > (32 << 20) else None

    out = pl.pallas_call(
        _block_kernel,
        out_shape=jax.ShapeDtypeStruct((B, C, HW), jnp.float32),
        grid=(B,),
        in_specs=[x_spec, par_spec, mat_spec],
        out_specs=x_spec,
        compiler_params=pltpu.CompilerParams(
            dimension_semantics=("parallel",),
            vmem_limit_bytes=vmem_limit),
    )(x, chan_params, perm_mat)

    return out.reshape(B, C, H, W)


# --------------------------- pure-JAX reference ------------------------------
def reference(x, params, num_heads):
    B, C, H, W = x.shape
    x = x.astype(jnp.float32)
    # norm1 (WithBias LayerNorm over channels, per pixel, biased variance)
    x3 = jnp.transpose(x.reshape(B, C, H * W), (0, 2, 1))
    mu = x3.mean(-1, keepdims=True)
    var = jnp.square(x3 - mu).mean(-1, keepdims=True)
    y3 = (x3 - mu) / jnp.sqrt(var + LN_EPS) * params["ln_w"] + params["ln_b"]
    y = jnp.transpose(y3, (0, 2, 1)).reshape(B, C, H, W)
    # Attention_sa
    Ch = C // num_heads
    Cg = Ch // GROUPS
    half = Cg // 2
    cwe = params["cweight"][None, :, None, None]
    cbi = params["cbias"][None, :, None, None]
    swe = params["sweight"][None, :, None, None]
    sbi = params["sbias"][None, :, None, None]
    gnw = params["gn_w"][None, :, None, None]
    gnb = params["gn_b"][None, :, None, None]
    outs = []
    for hd in range(num_heads):
        head = y[:, hd * Ch:(hd + 1) * Ch].reshape(B * GROUPS, Cg, H, W)
        x0, x1 = head[:, :half], head[:, half:]
        xn = x0.mean(axis=(2, 3), keepdims=True)
        xn = x0 * jax.nn.sigmoid(cwe * xn + cbi)
        m = x1.mean(axis=(2, 3), keepdims=True)
        v = jnp.square(x1 - m).mean(axis=(2, 3), keepdims=True)
        gnorm = (x1 - m) / jnp.sqrt(v + GN_EPS) * gnw + gnb
        xs = x1 * jax.nn.sigmoid(swe * gnorm + sbi)
        out = jnp.concatenate([xn, xs], axis=1).reshape(B, Ch, H, W)
        out = out.reshape(B, 2, Ch // 2, H, W).transpose(0, 2, 1, 3, 4).reshape(B, Ch, H, W)
        outs.append(out)
    return x + jnp.concatenate(outs, axis=1)


# ---------------------------------- main -------------------------------------
if __name__ == "__main__":
    dim, num_heads = 64, 2
    B, H, W = 2, 8, 8
    Ch = dim // num_heads
    half = Ch // (2 * GROUPS)

    key = jax.random.PRNGKey(0)
    ks = jax.random.split(key, 9)
    x = jax.random.normal(ks[0], (B, dim, H, W), jnp.float32)

    # deterministic parameter init (shapes from __init__; small perturbations around
    # the module defaults so every branch is exercised)
    params = {
        "ln_w": 1.0 + 0.1 * jax.random.normal(ks[1], (dim,), jnp.float32),
        "ln_b": 0.1 * jax.random.normal(ks[2], (dim,), jnp.float32),
        "cweight": 0.5 * jax.random.normal(ks[3], (half,), jnp.float32),
        "cbias": 1.0 + 0.1 * jax.random.normal(ks[4], (half,), jnp.float32),
        "sweight": 0.5 * jax.random.normal(ks[5], (half,), jnp.float32),
        "sbias": 1.0 + 0.1 * jax.random.normal(ks[6], (half,), jnp.float32),
        "gn_w": 1.0 + 0.1 * jax.random.normal(ks[7], (half,), jnp.float32),
        "gn_b": 0.1 * jax.random.normal(ks[8], (half,), jnp.float32),
    }
    params = {k: np.asarray(v) for k, v in params.items()}

    out = jax.block_until_ready(transformer_block_sa(x, params, num_heads))
    ref = jax.block_until_ready(reference(x, params, num_heads))
    np.testing.assert_allclose(np.asarray(out), np.asarray(ref), atol=2e-5, rtol=2e-5)

    # TODO(synk): norm2 / FeedForward exist in __init__ but are never called in forward.
    print("KERNEL_OK")
</pallas_src>

<mosaic_0001>
module attributes {stable_mosaic.version = 11 : i64} {
  func.func @_block_kernel(%arg0: i32, %arg1: memref<1x64x64xf32, #tpu.memory_space<vmem>>, %arg2: memref<64x5xf32, #tpu.memory_space<vmem>>, %arg3: memref<64x64xf32, #tpu.memory_space<vmem>>, %arg4: memref<1x64x64xf32, #tpu.memory_space<vmem>>) attributes {dimension_semantics = [#tpu.dimension_semantics<parallel>], iteration_bounds = array<i64: 2>, scalar_prefetch = 0 : i64, scratch_operands = 0 : i64, tpu.core_type = #tpu.core_type<tc>, window_params = [{transform_indices = @transform_0, window_bounds = array<i64: 1, 64, 64>}, {pipeline_mode = #tpu.pipeline_mode<synchronous>, transform_indices = @transform_1, window_bounds = array<i64: 64, 5>}, {pipeline_mode = #tpu.pipeline_mode<synchronous>, transform_indices = @transform_2, window_bounds = array<i64: 64, 64>}, {transform_indices = @transform_3, window_bounds = array<i64: 1, 64, 64>}]} {
    %c0 = arith.constant 0 : index
    %c0_0 = arith.constant 0 : index
    %c0_1 = arith.constant 0 : index
    %0 = vector.load %arg1[%c0, %c0_0, %c0_1] : memref<1x64x64xf32, #tpu.memory_space<vmem>>, vector<1x64x64xf32>
    %1 = vector.shape_cast %0 : vector<1x64x64xf32> to vector<64x64xf32>
    %c0_2 = arith.constant 0 : index
    %c0_3 = arith.constant 0 : index
    %2 = vector.load %arg2[%c0_2, %c0_3] : memref<64x5xf32, #tpu.memory_space<vmem>>, vector<64x5xf32>
    %3 = vector.extract_strided_slice %2 {offsets = [0, 0], sizes = [64, 1], strides = [1, 1]} : vector<64x5xf32> to vector<64x1xf32>
    %4 = vector.extract_strided_slice %2 {offsets = [0, 1], sizes = [64, 1], strides = [1, 1]} : vector<64x5xf32> to vector<64x1xf32>
    %5 = vector.extract_strided_slice %2 {offsets = [0, 2], sizes = [64, 1], strides = [1, 1]} : vector<64x5xf32> to vector<64x1xf32>
    %6 = vector.extract_strided_slice %2 {offsets = [0, 3], sizes = [64, 1], strides = [1, 1]} : vector<64x5xf32> to vector<64x1xf32>
    %7 = vector.extract_strided_slice %2 {offsets = [0, 4], sizes = [64, 1], strides = [1, 1]} : vector<64x5xf32> to vector<64x1xf32>
    %cst = arith.constant dense<0.000000e+00> : vector<64xf32>
    %8 = vector.multi_reduction <add>, %1, %cst [0] : vector<64x64xf32> to vector<64xf32>
    %9 = vector.shape_cast %8 : vector<64xf32> to vector<1x64xf32>
    %cst_4 = arith.constant 6.400000e+01 : f32
    %10 = vector.broadcast %cst_4 : f32 to vector<1x64xf32>
    %11 = arith.divf %9, %10 : vector<1x64xf32>
    %12 = arith.mulf %1, %1 : vector<64x64xf32>
    %cst_5 = arith.constant dense<0.000000e+00> : vector<64xf32>
    %13 = vector.multi_reduction <add>, %12, %cst_5 [0] : vector<64x64xf32> to vector<64xf32>
    %14 = vector.shape_cast %13 : vector<64xf32> to vector<1x64xf32>
    %cst_6 = arith.constant 6.400000e+01 : f32
    %15 = vector.broadcast %cst_6 : f32 to vector<1x64xf32>
    %16 = arith.divf %14, %15 : vector<1x64xf32>
    %17 = arith.mulf %11, %11 : vector<1x64xf32>
    %18 = arith.subf %16, %17 : vector<1x64xf32>
    %19 = vector.broadcast %11 : vector<1x64xf32> to vector<64x64xf32>
    %20 = arith.subf %1, %19 : vector<64x64xf32>
    %cst_7 = arith.constant 9.99999974E-6 : f32
    %21 = vector.broadcast %cst_7 : f32 to vector<1x64xf32>
    %22 = arith.addf %18, %21 : vector<1x64xf32>
    %23 = math.rsqrt %22 : vector<1x64xf32>
    %24 = vector.broadcast %23 : vector<1x64xf32> to vector<64x64xf32>
    %25 = arith.mulf %20, %24 : vector<64x64xf32>
    %26 = vector.broadcast %3 : vector<64x1xf32> to vector<64x64xf32>
    %27 = arith.mulf %25, %26 : vector<64x64xf32>
    %28 = vector.broadcast %4 : vector<64x1xf32> to vector<64x64xf32>
    %29 = arith.addf %27, %28 : vector<64x64xf32>
    %cst_8 = arith.constant dense<0.000000e+00> : vector<64xf32>
    %30 = vector.multi_reduction <add>, %29, %cst_8 [1] : vector<64x64xf32> to vector<64xf32>
    %31 = vector.shape_cast %30 : vector<64xf32> to vector<64x1xf32>
    %cst_9 = arith.constant 6.400000e+01 : f32
    %32 = vector.broadcast %cst_9 : f32 to vector<64x1xf32>
    %33 = arith.divf %31, %32 : vector<64x1xf32>
    %34 = arith.mulf %29, %29 : vector<64x64xf32>
    %cst_10 = arith.constant dense<0.000000e+00> : vector<64xf32>
    %35 = vector.multi_reduction <add>, %34, %cst_10 [1] : vector<64x64xf32> to vector<64xf32>
    %36 = vector.shape_cast %35 : vector<64xf32> to vector<64x1xf32>
    %cst_11 = arith.constant 6.400000e+01 : f32
    %37 = vector.broadcast %cst_11 : f32 to vector<64x1xf32>
    %38 = arith.divf %36, %37 : vector<64x1xf32>
    %39 = arith.mulf %33, %33 : vector<64x1xf32>
    %40 = arith.subf %38, %39 : vector<64x1xf32>
    %41 = vector.broadcast %33 : vector<64x1xf32> to vector<64x64xf32>
    %42 = arith.subf %29, %41 : vector<64x64xf32>
    %cst_12 = arith.constant 9.99999974E-6 : f32
    %43 = vector.broadcast %cst_12 : f32 to vector<64x1xf32>
    %44 = arith.addf %40, %43 : vector<64x1xf32>
    %45 = math.rsqrt %44 : vector<64x1xf32>
    %46 = vector.broadcast %45 : vector<64x1xf32> to vector<64x64xf32>
    %47 = arith.mulf %42, %46 : vector<64x64xf32>
    %48 = arith.mulf %5, %33 : vector<64x1xf32>
    %49 = vector.broadcast %6 : vector<64x1xf32> to vector<64x64xf32>
    %50 = arith.mulf %49, %47 : vector<64x64xf32>
    %51 = vector.broadcast %48 : vector<64x1xf32> to vector<64x64xf32>
    %52 = arith.addf %51, %50 : vector<64x64xf32>
    %53 = vector.broadcast %7 : vector<64x1xf32> to vector<64x64xf32>
    %54 = arith.addf %52, %53 : vector<64x64xf32>
    %55 = arith.negf %54 : vector<64x64xf32>
    %56 = math.exp %55 : vector<64x64xf32>
    %cst_13 = arith.constant 1.000000e+00 : f32
    %57 = vector.broadcast %cst_13 : f32 to vector<64x64xf32>
    %58 = arith.addf %57, %56 : vector<64x64xf32>
    %59 = arith.divf %57, %58 : vector<64x64xf32>
    %60 = arith.mulf %29, %59 : vector<64x64xf32>
    %c0_14 = arith.constant 0 : index
    %c0_15 = arith.constant 0 : index
    %61 = vector.load %arg3[%c0_14, %c0_15] : memref<64x64xf32, #tpu.memory_space<vmem>>, vector<64x64xf32>
    %cst_16 = arith.constant dense<0.000000e+00> : vector<64x64xf32>
    %62 = tpu.matmul %61, %60, %cst_16 {dimension_numbers = #tpu.dot_dimension_numbers<[1], [0], [0], [1], [0, 0, 1, 1], [], []>, precision = #tpu.contract_precision<fp32>} : vector<64x64xf32>, vector<64x64xf32>, vector<64x64xf32> -> vector<64x64xf32>
    %63 = arith.addf %1, %62 : vector<64x64xf32>
    %c0_17 = arith.constant 0 : index
    %c0_18 = arith.constant 0 : index
    %c0_19 = arith.constant 0 : index
    %64 = vector.load %arg4[%c0_17, %c0_18, %c0_19] : memref<1x64x64xf32, #tpu.memory_space<vmem>>, vector<1x64x64xf32>
    %65 = vector.shape_cast %64 : vector<1x64x64xf32> to vector<64x64xf32>
    %66 = vector.shape_cast %63 : vector<64x64xf32> to vector<1x64x64xf32>
    tpu.vector_store %arg4[%c0_17, %c0_18, %c0_19], %66 {strides = array<i32>} : memref<1x64x64xf32, #tpu.memory_space<vmem>>, vector<1x64x64xf32>,
    return
  }
  func.func @transform_0(%arg0: i32) -> (i32, i32, i32) {
    %c0_i32 = arith.constant 0 : i32
    %c0_i32_0 = arith.constant 0 : i32
    %c0_i32_1 = arith.constant 0 : i32
    return %arg0, %c0_i32, %c0_i32_0 : i32, i32, i32
  }
  func.func @transform_1(%arg0: i32) -> (i32, i32) {
    %c0_i32 = arith.constant 0 : i32
    %c0_i32_0 = arith.constant 0 : i32
    %c0_i32_1 = arith.constant 0 : i32
    return %c0_i32, %c0_i32_0 : i32, i32
  }
  func.func @transform_2(%arg0: i32) -> (i32, i32) {
    %c0_i32 = arith.constant 0 : i32
    %c0_i32_0 = arith.constant 0 : i32
    %c0_i32_1 = arith.constant 0 : i32
    return %c0_i32, %c0_i32_0 : i32, i32
  }
  func.func @transform_3(%arg0: i32) -> (i32, i32, i32) {
    %c0_i32 = arith.constant 0 : i32
    %c0_i32_0 = arith.constant 0 : i32
    %c0_i32_1 = arith.constant 0 : i32
    return %arg0, %c0_i32, %c0_i32_0 : i32, i32, i32
  }
}

</mosaic_0001>

<bundles_post_ra>
// kernel: tpu_custom_call.1
= control target key start
LH: loop header
LB: loop body
LE: loop exit
PB: predicated region body
PF: predicated region fallthrough
CT: control target
= control target key end

     0   :  { %8 = vsyncpa [#allocation3], 0  ;;  %s3057_s0 = inlined_call_operand.hbm [shape: f32[2,64,64], index: 0, kind: input, shape index: {}]   ;;  %s3058_s1 = inlined_call_operand.vmem [shape: f32[64,5], index: 1, kind: input, shape index: {}]   ;;  %s3059_s2 = inlined_call_operand.vmem [shape: f32[64,64], index: 2, kind: input, shape index: {}]   ;;  %s3060_s3 = inlined_call_operand.hbm [shape: f32[2,64,64], index: 3, kind: output, shape index: {}]  }
   0x1   :  { %10 = vsyncpa [#allocation3 + $0x1], 0 }
   0x2   :  { %11 = vsyncpa [#allocation4], 0 }
   0x3   :  { %13 = vsyncpa [#allocation4 + $0x1], 0  ;;  %s2339_s12 = smov 0   ;;  %s2341_s13 = smov 0  }
   0x4   :  { %s2343_s14 = smov 0   ;;  %s2345_s15 = smov 0  }
   0x5 LB: > { %s2360_s16 = sadd.s32 4294967295, %s2306_s15   ;;  %s1652_s17 = sadd.s32 4294967294, %s2306_s15   ;;  %s2306_s15 = sphi %s2345_s15, %s3073_s15   ;;  %s2302_s14 = sphi %s2343_s14, %s3072_s14   ;;  %s2298_s13 = sphi %s2341_s13, %s3071_s13   ;;  %s2294_s12 = sphi %s2339_s12, %s3070_s12  }
   0x6   : > { %s2364_s18 = sadd.s32 1, %s2306_s15   ;;  %s26_s19 = sadd.s32 1, %s2302_s14 }
   0x7   : > { %s23_s20 = ssub.s32 %s2306_s15, %s2364_s18  ;;  %p33_p0 = scmp.ne.s32.totalorder %s2302_s14, %s2298_s13 }
   0x8   : > { %p24_p1 = scmp.eq.s32.totalorder %s23_s20, 0  ;;  %p34_p2 = scmp.eq.s32.totalorder %s2306_s15, 0 }
   0x9   : > { %p39_p3 = scmp.ne.s32.totalorder %s2298_s13, %s2294_s12  ;;  %p40_p4 = scmp.eq.s32.totalorder %s2360_s16, 0 }
   0xa   : > { %s2376_s21 = scalar_select %p24_p1, %s2302_s14, %s26_s19  }
   0xb   : > { %p2378_p5 = por %p34_p2, %p33_p0  ;;  %p2382_p6 = por %p40_p4, %p39_p3 }
   0xc   : > { %p105_p7 = scmp.eq.s32.totalorder %s2360_s16, 1  ;;  %p111_p8 = scmp.eq.s32.totalorder %s1652_s17, 1 }
   0xd   : > { %p2088_p10 = scmp.lt.s32.totalorder %s2306_s15, 2  ;;  %s137_s26 = sand.u32 1, %s2302_s14  }
   0xe   : > { %p2389_p11 = por %p105_p7, %p33_p0  ;;  %p2393_p12 = por %p111_p8, %p39_p3 }
   0xf   : > { %s1674_s27 = sshll.u32 %s2306_s15, 10  ;;  %s1655_s28 = sshll.u32 %s137_s26, 6 }
  0x10   : > { %s3064_s24 = scalar_select %p2389_p11, 1, 0 }
  0x11   : > { %s3065_s25 = scalar_select %p2393_p12, 1, 0 }
  0x12   : > { %s2402_s4 = scalar_lea.hbm %s3057_s0, %s1674_s27  ;;  %s141_s5 = scalar_lea.vmem [#allocation2], %s1655_s28 }
  0x13   : > { %s148_s6 = sshll.u32 %s141_s5, 4  ;;  %p2406_p13 = pnand %p2088_p10, %p2378_p5  ;;  %s2410_s6 = int_to_ptr.vmem [resolvable:$true] %s148_s6 }
  0x14   : > { %s2412_s8 = scalar_lea.sflag [#allocation3], %s137_s26  ;;  %s2210_s9 = scalar_lea.hbm %s2402_s4, 1024 }
  0x15   : > { %p2211_p0 = scmp.ne.s32.totalorder %s2402_s4, %s2210_s9  ;;  %p2212_p1 = pneg %p2406_p13 }
  0x16   : > { %s2215_s17 = scalar_lea.hbm %s3057_s0, 2048  ;;  %p2216_p4 = scmp.lt.u32.totalorder %s2402_s4, %s3057_s0 }
  0x17   : > { %p2213_p2 = pnand %p2212_p1, %p2211_p0  ;;  %p2217_p5 = scmp.lt.u32.totalorder %s2215_s17, %s2210_s9 }
  0x18   : > { %p2219_p8 = scmp.lt.u32.totalorder %s2210_s9, %s2402_s4 }
  0x19   : > { %p2214_p3 = pneg %p2213_p2  ;;  %p2218_p7 = por %p2217_p5, %p2216_p4 }
  0x1b   : > { %p2220_p10 = por %p2219_p8, %p2218_p7 }
  0x1d   : > { %p2221_p9 = pnand %p2220_p10, %p2214_p3 }
  0x1f   : > { %2224 = shalt.err (!%p2221_p9)
}
  0x20   : > { %s2225_s22 = scalar_lea.vmem %s2410_s6, 1024  ;;  %s2308_s26 = smov [#allocation2]  }
  0x21   : > { %p2226_p0 = scmp.ne.s32.totalorder %s2410_s6, %s2225_s22  ;;  %s2230_s27 = sshll.u32 %s2308_s26, 4  ;;  %s2231_s27 = int_to_ptr.vmem [resolvable:$false] %s2230_s27 }
  0x22   : > { %s2232_s28 = scalar_lea.vmem %s2231_s27, 2048  ;;  %p2233_p11 = scmp.lt.s32.totalorder %s2410_s6, %s2231_s27 }
  0x23   : > { %p2228_p2 = pnand %p2226_p0, %p2212_p1  ;;  %p2234_p4 = scmp.lt.s32.totalorder %s2232_s28, %s2225_s22 }
  0x25   : > { %p2229_p12 = pneg %p2228_p2  ;;  %p2235_p5 = por %p2234_p4, %p2233_p11 }
  0x27   : > { %p2236_p7 = pnand %p2235_p5, %p2229_p12 }
  0x29   : > { %2239 = shalt.err (!%p2236_p7)
}
  0x2a   : > { %s2309_s29 = smov 128   ;;  %s2310_s30 = smov 8  }
  0x2b   : > { %2083 = dma.hbm_to_vmem [thread:$0]  (!%p2406_p13), %s2402_s4, 1024, %s2410_s6, %s2412_s8, %s2309_s29, %s2309_s29, %s2310_s30  }
  0x2c   : > { %p1658_p9 = scmp.ge.s32.totalorder %s2306_s15, 1  ;;  %p156_p1 = scmp.lt.s32.totalorder %s2306_s15, 3 }
  0x2e   : > { %p157_p3 = pnand %p1658_p9, %p156_p1 }
  0x2f   : > { %s2443_s5 = sand.u32 (!%p157_p3), 1, %s2298_s13  }
  0x30   : > { %160 = sbr.rel (%p157_p3) target bundleno = 886 (0x376), region = 32  ;;  %s1659_s9 = sshll.u32 (!%p157_p3), %s2443_s5, 6 }
  0x31   : > { %s163_s10 = scalar_lea.sflag (!%p157_p3), [#allocation3], %s2443_s5  ;;  %s2449_s11 = scalar_lea.vmem (!%p157_p3), [#allocation2], %s1659_s9 }
  0x37   : > { %2285 = dma.done.wait (%p2382_p6), %s163_s10, 1024  }
  0x38   : > { %2287 = vsyncadd (%p2382_p6), %s163_s10, 4294966272  ;;  %v2311_v0 = vmov 1   ;;  %v2312_v1 = vmov 0   ;;  %v2458_v2 = vld [vmem:[%s3058_s1] sm:$0xff]  ;;  %v2465_v3 = vld [vmem:[%s3058_s1 + $0x8] sm:$0xff]  ;;  %v2313_v10 = vmov 3  }
  0x39   : > { %2132 = vset.pattern.permute.xlu1 %v2311_v0  ;;  %2131 = vset.pattern.permute.xlu0 %v2312_v1  ;;  %v2472_v4 = vld [vmem:[%s3058_s1 + $0x10] sm:$0xff]  ;;  %v2477_v5 = vld [vmem:[%s3058_s1 + $0x18] sm:$0xff]  ;;  %v2484_v6 = vld [vmem:[%s3058_s1 + $0x28] sm:$0xff]  ;;  %vm205_vm0 = vcmask 523264   ;;  %s2982_s7 = scalar_lea.vmem [#allocation5], %s1659_s9  ;;  %s1675_s9 = sshll.u32 %s2360_s16, 10 }
  0x3a   : > { %328 = vperm.xlu1 %2132, %v2458_v2   ;;  %281 = vperm.xlu0 %2131, %v2458_v2   ;;  %v2490_v7 = vld [vmem:[%s3058_s1 + $0x30] sm:$0xff]  ;;  %v2497_v8 = vld [vmem:[%s3058_s1 + $0x20] sm:$0xff]  ;;  %v2507_v9 = vld [vmem:[%s3058_s1 + $0x38] sm:$0xff]  ;;  %s1579_s8 = sshll.u32 %s2982_s7, 4  ;;  %s3006_s19 = scalar_lea.hbm %s3060_s3, %s1675_s9  ;;  %s3008_s8 = int_to_ptr.vmem [resolvable:$true] %s1579_s8 }
  0x3b   : > { %v2512_v11 = vld [vmem:[%s2449_s11] sm:$0xff]  ;;  %v2515_v12 = vld [vmem:[%s2449_s11 + $0x8] sm:$0xff]  ;;  %v2527_v17 = vld [vmem:[%s2449_s11 + $0x10] sm:$0xff]  ;;  %s1566_s16 = scalar_lea.sflag [#allocation4], %s2443_s5  ;;  %s2240_s20 = scalar_lea.vmem %s3008_s8, 1024 }
  0x3c   : > { %v206_v13 = vsel %vm205_vm0, %v2512_v11, 0.0  ;;  %v207_v14 = vsel %vm205_vm0, %v2515_v12, 0.0  ;;  %v229_v15 = vmul.f32 %v2512_v11, %v2512_v11  ;;  %v230_v16 = vmul.f32 %v2515_v12, %v2515_v12  ;;  %v2537_v23 = vld [vmem:[%s2449_s11 + $0x18] sm:$0xff]  ;;  %v2545_v29 = vld [vmem:[%s2449_s11 + $0x20] sm:$0xff]  ;;  %v2553_v35 = vld [vmem:[%s2449_s11 + $0x28] sm:$0xff]  ;;  %p2241_p6 = scmp.ne.s32.totalorder %s3008_s8, %s2240_s20  ;;  %p3067_p11 = scmp.ne.s32.totalorder %s3064_s24, 0 }
  0x3d   : > { %v208_v18 = vadd.f32 %v207_v14, %v206_v13  ;;  %v209_v19 = vsel %vm205_vm0, %v2527_v17, 0.0  ;;  %v231_v20 = vmul.f32 %v2527_v17, %v2527_v17  ;;  %v211_v26 = vsel %vm205_vm0, %v2537_v23, 0.0  ;;  %v2561_v41 = vld [vmem:[%s2449_s11 + $0x30] sm:$0xff]  ;;  %v2569_v47 = vld [vmem:[%s2449_s11 + $0x38] sm:$0xff]  ;;  %s2316_s22 = smov [#allocation5]  }
  0x3e   : > { %332 = vperm.xlu1 %2132, %v2465_v3   ;;  %286 = vperm.xlu0 %2131, %v2465_v3   ;;  %v237_v21 = vsel %vm205_vm0, %v229_v15, 0.0  ;;  %v238_v22 = vsel %vm205_vm0, %v230_v16, 0.0  ;;  %v232_v27 = vmul.f32 %v2537_v23, %v2537_v23  ;;  %v213_v32 = vsel %vm205_vm0, %v2545_v29, 0.0  ;;  %p2242_p12 = pnand %p2241_p6, %p3067_p11  ;;  %s2244_s26 = sshll.u32 %s2316_s22, 4  ;;  %s2245_s26 = int_to_ptr.vmem [resolvable:$false] %s2244_s26 }
  0x3f   : > { %v210_v24 = vadd.f32 %v209_v19, %v208_v18  ;;  %v239_v25 = vadd.f32 %v238_v22, %v237_v21  ;;  %v240_v28 = vsel %vm205_vm0, %v231_v20, 0.0  ;;  %v233_v33 = vmul.f32 %v2545_v29, %v2545_v29  ;;  %s2246_s27 = scalar_lea.vmem %s2245_s26, 2048  ;;  %p2247_p8 = scmp.lt.s32.totalorder %s3008_s8, %s2245_s26 }
  0x40   : > { %v242_v34 = vsel %vm205_vm0, %v232_v27, 0.0  ;;  %v215_v38 = vsel %vm205_vm0, %v2553_v35, 0.0  ;;  %v234_v39 = vmul.f32 %v2553_v35, %v2553_v35  ;;  %v217_v44 = vsel %vm205_vm0, %v2561_v41, 0.0  ;;  %p2243_p13 = pneg %p2242_p12  ;;  %p2248_p10 = scmp.lt.s32.totalorder %s2246_s27, %s2240_s20 }
  0x41   : > { %v212_v30 = vadd.f32 %v211_v26, %v210_v24  ;;  %v241_v31 = vadd.f32 %v240_v28, %v239_v25  ;;  %v244_v40 = vsel %vm205_vm0, %v233_v33, 0.0  ;;  %v235_v45 = vmul.f32 %v2561_v41, %v2561_v41 }
  0x42   : > { %2133 = vset.pattern.permute.xlu1 %v2312_v1  ;;  %291 = vperm.xlu0 %2131, %v2472_v4   ;;  %v246_v46 = vsel %vm205_vm0, %v234_v39, 0.0  ;;  %v219_v50 = vsel %vm205_vm0, %v2569_v47, 0.0  ;;  %v236_v51 = vmul.f32 %v2569_v47, %v2569_v47  ;;  %p2249_p0 = por %p2248_p10, %p2247_p8 }
  0x43   : > { %296 = vperm.xlu1 %2133, %v2477_v5   ;;  %v214_v36 = vadd.f32 %v213_v32, %v212_v30  ;;  %v243_v37 = vadd.f32 %v242_v34, %v241_v31  ;;  %v248_v52 = vsel %vm205_vm0, %v235_v45, 0.0 }
  0x44   : > { %v250_v55 = vsel %vm205_vm0, %v236_v51, 0.0  ;;  %p2250_p2 = pnand %p2249_p0, %p2243_p13 }
  0x45   : > { %v216_v42 = vadd.f32 %v215_v38, %v214_v36  ;;  %v245_v43 = vadd.f32 %v244_v40, %v243_v37 }
  0x46   : > { %306 = vperm.xlu0 %2131, %v2484_v6  }
  0x47   : > { %2134 = vset.pattern.permute.xlu1 %v2311_v0  ;;  %v218_v48 = vadd.f32 %v217_v44, %v216_v42  ;;  %v247_v49 = vadd.f32 %v246_v46, %v245_v43 }
  0x48   : > { %340 = vperm.xlu1 %2134, %v2477_v5  }
  0x49   : > { %v220_v53 = vadd.f32 %v219_v50, %v218_v48  ;;  %v249_v54 = vadd.f32 %v248_v52, %v247_v49 }
  0x4a   : > { %311 = vperm.xlu0 %2131, %v2490_v7  }
  0x4b   : > { %v221_v56 = vrot.slane %v220_v53, 4  ;;  %v251_v57 = vadd.f32 %v250_v55, %v249_v54 }
  0x4c   : > { %2135 = vset.pattern.permute.xlu1 %v2312_v1 }
  0x4d   : > { %301 = vperm.xlu1 %2135, %v2497_v8   ;;  %v222_v58 = vadd.f32 %v221_v56, %v220_v53  ;;  %v252_v59 = vrot.slane %v251_v57, 4 }
  0x4e   : > { %2137 = vset.pattern.permute.xlu0 %v2311_v0 }
  0x4f   : > { %336 = vperm.xlu0 %2137, %v2472_v4   ;;  %v223_v60 = vrot.slane %v222_v58, 2  ;;  %v253_v61 = vadd.f32 %v252_v59, %v251_v57 }
  0x51   : > { %2136 = vset.pattern.permute.xlu1 %v2311_v0  ;;  %v224_v62 = vadd.f32 %v223_v60, %v222_v58  ;;  %v254_v63 = vrot.slane %v253_v61, 2 }
  0x52   : > { %344 = vperm.xlu1 %2136, %v2497_v8  }
  0x53   : > { %352 = vperm.xlu0 %2137, %v2490_v7  }
  0x56   : > { %348 = vperm.xlu1 %2136, %v2484_v6  }
  0x57   : > { %2140 = vset.pattern.permute.xlu0 %v2313_v10 }
  0x5a   : > { %2138 = vset.pattern.permute.xlu1 %v2312_v1  ;;  %v255_v1 = vadd.f32 %v254_v63, %v253_v61 }
  0x5b   : > { %316 = vperm.xlu1 %2138, %v2507_v9  }
  0x5c   : > { %v256_v14 = vrot.slane %v255_v1, 1 }
  0x5e   : > { %v257_v16 = vadd.f32 %v256_v14, %v255_v1 }
  0x5f   : > { %2139 = vset.pattern.permute.xlu1 %v2311_v0  ;;  %v225_v0 = vrot.slane %v224_v62, 1 }
  0x60   : > { %356 = vperm.xlu1 %2139, %v2507_v9   ;;  %v258_v18 = vmul.f32 0.015625, %v257_v16 }
  0x61   : > { %v226_v13 = vadd.f32 %v225_v0, %v224_v62 }
  0x63   : > { %v2577_v15 = vmul.f32 0.015625, %v226_v13 }
  0x64   : > { %2141 = vset.pattern.permute.xlu1 %v2313_v10 }
  0x65   : > { %v259_v19 = vmul.f32 %v2577_v15, %v2577_v15  ;;  %v261_v22 = vsub.f32 %v2512_v11, %v2577_v15  ;;  %v262_v26 = vsub.f32 %v2515_v12, %v2577_v15  ;;  %v264_v37 = vsub.f32 %v2537_v23, %v2577_v15 }
  0x66   : > { %v263_v43 = vsub.f32 %v2527_v17, %v2577_v15  ;;  %v265_v23 = vsub.f32 %v2545_v29, %v2577_v15  ;;  %v267_v52 = vsub.f32 %v2561_v41, %v2577_v15  ;;  %v266_v17 = vsub.f32 %v2553_v35, %v2577_v15 }
  0x67   : > { %v260_v20 = vsub.f32 %v258_v18, %v259_v19  ;;  %v2314_v19 = vmov 4  }
  0x69   : > { %v269_v21 = vadd.f32 1e-05, %v260_v20 }
  0x6b   : > { %2152 = vrsqrt.f32 %v269_v21 }
  0x75   : > { %v2583_v24 = vpop.eup %2152 }
  0x76   : > { %v271_v25 = vmul.f32 %v2583_v24, %v261_v22  ;;  %v272_v31 = vmul.f32 %v2583_v24, %v262_v26  ;;  %v274_v40 = vmul.f32 %v2583_v24, %v264_v37  ;;  %v273_v49 = vmul.f32 %v2583_v24, %v263_v43 }
  0x77   : > { %v275_v54 = vmul.f32 %v2583_v24, %v265_v23  ;;  %v277_v29 = vmul.f32 %v2583_v24, %v267_v52  ;;  %v276_v58 = vmul.f32 %v2583_v24, %v266_v17  ;;  %v2315_v43 = vmov 2  }
  0xb9   : > { %v329_v27 = vpop.permute.xlu1 %328  ;;  %v282_v28 = vpop.permute.xlu0 %281 }
  0xba   : > { %v319_v30 = vmul.f32 %v282_v28, %v271_v25 }
  0xbc   : > { %v2589_v32 = vadd.f32 %v329_v27, %v319_v30  ;;  %v268_v30 = vsub.f32 %v2569_v47, %v2577_v15 }
  0xbd   : > { %v333_v33 = vpop.permute.xlu1 %332  ;;  %v287_v34 = vpop.permute.xlu0 %286 }
  0xbe   : > { %v320_v36 = vmul.f32 %v287_v34, %v272_v31  ;;  %v367_v11 = vsel %vm205_vm0, %v2589_v32, 0.0  ;;  %v399_v20 = vmul.f32 %v2589_v32, %v2589_v32  ;;  %v278_v34 = vmul.f32 %v2583_v24, %v268_v30 }
  0xbf   : > { %368 = vadd.xlane.f32.xlu1 %v367_v11 }
  0xc0   : > { %v2595_v38 = vadd.f32 %v333_v33, %v320_v36  ;;  %v407_v21 = vsel %vm205_vm0, %v399_v20, 0.0 }
  0xc1   : > { %v292_v12 = vpop.permute.xlu0 %291 }
  0xc2   : > { %v297_v39 = vpop.permute.xlu1 %296  ;;  %v370_v42 = vsel %vm205_vm0, %v2595_v38, 0.0  ;;  %v321_v55 = vmul.f32 %v292_v12, %v273_v49 }
  0xc3   : > { %371 = vadd.xlane.f32.xlu0 %v370_v42  ;;  %v322_v45 = vmul.f32 %v297_v39, %v274_v40  ;;  %v400_v39 = vmul.f32 %v2595_v38, %v2595_v38 }
  0xc5   : > { %v307_v44 = vpop.permute.xlu0 %306  ;;  %v410_v40 = vsel %vm205_vm0, %v400_v39, 0.0 }
  0xc6   : > { %v324_v63 = vmul.f32 %v307_v44, %v276_v58 }
  0xc7   : > { %v341_v46 = vpop.permute.xlu1 %340 }
  0xc8   : > { %v2602_v48 = vadd.f32 %v341_v46, %v322_v45 }
  0xc9   : > { %v312_v50 = vpop.permute.xlu0 %311 }
  0xca   : > { %v376_v51 = vsel %vm205_vm0, %v2602_v48, 0.0  ;;  %v325_v35 = vmul.f32 %v312_v50, %v277_v29  ;;  %v402_v47 = vmul.f32 %v2602_v48, %v2602_v48 }
  0xcb   : > { %377 = vadd.xlane.f32.xlu1 %v376_v51 }
  0xcc   : > { %v302_v53 = vpop.permute.xlu1 %301  ;;  %v416_v15 = vsel %vm205_vm0, %v402_v47, 0.0 }
  0xcd   : > { %v323_v59 = vmul.f32 %v302_v53, %v275_v54 }
  0xce   : > { %v337_v56 = vpop.permute.xlu0 %336 }
  0xcf   : > { %v2615_v57 = vadd.f32 %v337_v56, %v321_v55 }
  0xd1   : > { %v345_v60 = vpop.permute.xlu1 %344  ;;  %v373_v41 = vsel %vm205_vm0, %v2615_v57, 0.0  ;;  %v401_v22 = vmul.f32 %v2615_v57, %v2615_v57 }
  0xd2   : > { %v2620_v61 = vadd.f32 %v345_v60, %v323_v59  ;;  %v353_v62 = vpop.permute.xlu0 %352  ;;  %374 = vadd.xlane.f32.xlu0 %v373_v41 }
  0xd3   : > { %v2624_v1 = vadd.f32 %v353_v62, %v325_v35  ;;  %v413_v25 = vsel %vm205_vm0, %v401_v22, 0.0 }
  0xd4   : > { %v379_v0 = vsel %vm205_vm0, %v2620_v61, 0.0  ;;  %v403_v26 = vmul.f32 %v2620_v61, %v2620_v61 }
  0xd5   : > { %v349_v13 = vpop.permute.xlu1 %348  ;;  %v385_v18 = vsel %vm205_vm0, %v2624_v1, 0.0  ;;  %v405_v28 = vmul.f32 %v2624_v1, %v2624_v1 }
  0xd6   : > { %v2626_v14 = vadd.f32 %v349_v13, %v324_v63  ;;  %380 = vadd.xlane.f32.xlu0 %v379_v0  ;;  %v419_v27 = vsel %vm205_vm0, %v403_v26, 0.0 }
  0xd7   : > { %v425_v31 = vsel %vm205_vm0, %v405_v28, 0.0 }
  0xd8   : > { %v382_v16 = vsel %vm205_vm0, %v2626_v14, 0.0  ;;  %v404_v24 = vmul.f32 %v2626_v14, %v2626_v14 }
  0xd9   : > { %383 = vadd.xlane.f32.xlu1 %v382_v16 }
  0xda   : > { %386 = vadd.xlane.f32.xlu0 %v385_v18  ;;  %v317_v33 = vpop.permute.xlu1 %316  ;;  %v422_v42 = vsel %vm205_vm0, %v404_v24, 0.0 }
  0xdb   : > { %v326_v36 = vmul.f32 %v317_v33, %v278_v34 }
  0xdf   : > { %v357_v11 = vpop.permute.xlu1 %356 }
  0xe0   : > { %v2659_v37 = vadd.f32 %v357_v11, %v326_v36 }
  0xe2   : > { %v388_v12 = vsel %vm205_vm0, %v2659_v37, 0.0  ;;  %v406_v49 = vmul.f32 %v2659_v37, %v2659_v37 }
  0xe4   : > { %v428_v52 = vsel %vm205_vm0, %v406_v49, 0.0 }
  0xea   : > { %500 = vperm.xlu1 %2141, %v2465_v3  }
  0xee   : > { %504 = vperm.xlu1 %2141, %v2472_v4  }
  0xf0   : > { %496 = vperm.xlu0 %2140, %v2458_v2  }
  0xf2   : > { %508 = vperm.xlu1 %2141, %v2477_v5  }
  0xf4   : > { %2144 = vset.pattern.permute.xlu0 %v2314_v19 }
  0xf6   : > { %2142 = vset.pattern.permute.xlu1 %v2314_v19 }
  0xf7   : > { %584 = vperm.xlu1 %2142, %v2458_v2  }
  0xfb   : > { %588 = vperm.xlu1 %2142, %v2465_v3  }
  0xff   : > { %2143 = vset.pattern.permute.xlu1 %v2313_v10 }
 0x100   : > { %512 = vperm.xlu1 %2143, %v2497_v8  }
 0x104   : > { %516 = vperm.xlu1 %2143, %v2484_v6  }
 0x108   : > { %2145 = vset.pattern.permute.xlu1 %v2314_v19 }
 0x10f   : > { %408 = vadd.xlane.f32.xlu0 %v407_v21 }
 0x113   : > { %414 = vadd.xlane.f32.xlu0 %v413_v25 }
 0x117   : > { %420 = vadd.xlane.f32.xlu0 %v419_v27 }
 0x11b   : > { %426 = vadd.xlane.f32.xlu0 %v425_v31 }
 0x128   : > { %389 = vadd.xlane.f32.xlu1 %v388_v12 }
 0x12c   : > { %411 = vadd.xlane.f32.xlu1 %v410_v40 }
 0x130   : > { %417 = vadd.xlane.f32.xlu1 %v416_v15 }
 0x131   : > { %592 = vperm.xlu0 %2144, %v2472_v4  }
 0x134   : > { %423 = vadd.xlane.f32.xlu1 %v422_v42 }
 0x135   : > { %600 = vperm.xlu0 %2144, %v2497_v8  }
 0x139   : > { %2149 = vset.pattern.permute.xlu0 %v2315_v43 }
 0x145   : > { %596 = vperm.xlu1 %2145, %v2477_v5  }
 0x149   : > { %2146 = vset.pattern.permute.xlu1 %v2313_v10 }
 0x14c   : > { %v369_v44 = vpop.xlane.xlu1 %368 }
 0x150   : > { %v372_v17 = vpop.xlane.xlu0 %371 }
 0x151   : > { %v2693_v54 = vmul.f32 0.015625, %v372_v17 }
 0x153   : > { %v488_v58 = vmul.f32 %v2693_v54, %v2465_v3 }
 0x158   : > { %v378_v45 = vpop.xlane.xlu1 %377 }
 0x159   : > { %v2676_v46 = vmul.f32 0.015625, %v378_v45  ;;  %v679_v45 = vld [vmem:[%s3059_s2] sm:$0xff] }
 0x15b   : > { %v490_v23 = vmul.f32 %v2676_v46, %v2477_v5  ;;  %v2689_v5 = vmul.f32 0.015625, %v369_v44 }
 0x15d   : > { %552 = vperm.xlu0 %2149, %v490_v23   ;;  %v487_v55 = vmul.f32 %v2689_v5, %v2458_v2 }
 0x15f   : > { %v375_v53 = vpop.xlane.xlu0 %374 }
 0x160   : > { %v2697_v29 = vmul.f32 0.015625, %v375_v53 }
 0x163   : > { %v381_v56 = vpop.xlane.xlu0 %380 }
 0x164   : > { %v395_v60 = vmul.f32 0.015625, %v381_v56 }
 0x166   : > { %v384_v50 = vpop.xlane.xlu1 %383  ;;  %v491_v2 = vmul.f32 %v395_v60, %v2497_v8  ;;  %v443_v20 = vmul.f32 %v395_v60, %v395_v60  ;;  %v459_v28 = vsub.f32 %v2620_v61, %v395_v60 }
 0x167   : > { %v2682_v51 = vmul.f32 0.015625, %v384_v50  ;;  %v387_v41 = vpop.xlane.xlu0 %386 }
 0x168   : > { %v2705_v62 = vmul.f32 0.015625, %v387_v41 }
 0x169   : > { %429 = vadd.xlane.f32.xlu1 %v428_v52  ;;  %v492_v10 = vmul.f32 %v2682_v51, %v2484_v6  ;;  %v444_v40 = vmul.f32 %v2682_v51, %v2682_v51  ;;  %v460_v42 = vsub.f32 %v2626_v14, %v2682_v51  ;;  %v442_v52 = vmul.f32 %v2676_v46, %v2676_v46 }
 0x16a   : > { %v2701_v59 = vpop.permute.xlu1 %500  ;;  %v493_v3 = vmul.f32 %v2705_v62, %v2490_v7 }
 0x16b   : > { %562 = vperm.xlu0 %2149, %v492_v10  }
 0x16e   : > { %v2708_v35 = vpop.permute.xlu1 %504 }
 0x16f   : > { %v2710_v63 = vpop.permute.xlu0 %496 }
 0x172   : > { %v2714_v0 = vpop.permute.xlu1 %508 }
 0x17a   : > { %520 = vperm.xlu1 %2146, %v2490_v7  }
 0x17e   : > { %524 = vperm.xlu1 %2146, %v2507_v9  }
 0x182   : > { %2147 = vset.pattern.permute.xlu1 %v2314_v19 }
 0x183   : > { %604 = vperm.xlu1 %2147, %v2484_v6   ;;  %v489_v6 = vmul.f32 %v2697_v29, %v2472_v4  ;;  %v2718_v4 = vpop.permute.xlu1 %584 }
 0x187   : > { %2148 = vset.pattern.permute.xlu1 %v2315_v43  ;;  %v2721_v18 = vpop.permute.xlu1 %588 }
 0x188   : > { %537 = vperm.xlu1 %2148, %v487_v55  }
 0x18b   : > { %v513_v26 = vpop.permute.xlu1 %512 }
 0x18c   : > { %542 = vperm.xlu1 %2148, %v488_v58  }
 0x18f   : > { %v517_v27 = vpop.permute.xlu1 %516 }
 0x190   : > { %547 = vperm.xlu1 %2148, %v489_v6   ;;  %v439_v6 = vmul.f32 %v2689_v5, %v2689_v5 }
 0x194   : > { %557 = vperm.xlu1 %2148, %v491_v2  }
 0x198   : > { %567 = vperm.xlu1 %2148, %v493_v3  }
 0x19c   : > { %v409_v13 = vpop.xlane.xlu0 %408  ;;  %2150 = vset.pattern.permute.xlu1 %v2314_v19 }
 0x19d   : > { %608 = vperm.xlu1 %2150, %v2490_v7   ;;  %v431_v58 = vmul.f32 0.015625, %v409_v13 }
 0x19f   : > { %v447_v41 = vsub.f32 %v431_v58, %v439_v6  ;;  %v445_v58 = vmul.f32 %v2705_v62, %v2705_v62 }
 0x1a0   : > { %v415_v16 = vpop.xlane.xlu0 %414 }
 0x1a1   : > { %612 = vperm.xlu1 %2150, %v2507_v9  }
 0x1a4   : > { %v421_v8 = vpop.xlane.xlu0 %420 }
 0x1a5   : > { %v435_v21 = vmul.f32 0.015625, %v421_v8  ;;  %v440_v8 = vmul.f32 %v2693_v54, %v2693_v54 }
 0x1a7   : > { %v451_v22 = vsub.f32 %v435_v21, %v443_v20  ;;  %v458_v21 = vsub.f32 %v2602_v48, %v2676_v46 }
 0x1a8   : > { %v427_v56 = vpop.xlane.xlu0 %426 }
 0x1a9   : > { %v467_v25 = vadd.f32 1e-05, %v451_v22  ;;  %v463_v22 = vadd.f32 1e-05, %v447_v41 }
 0x1ab   : > { %2154 = vrsqrt.f32 %v467_v25  ;;  %v433_v25 = vmul.f32 0.015625, %v415_v16 }
 0x1b0   : > { %v2748_v60 = vpop.permute.xlu0 %592 }
 0x1b4   : > { %v2754_v20 = vpop.permute.xlu0 %600 }
 0x1b5   : > { %v2155_v30 = vpop.eup %2154  ;;  %v390_v31 = vpop.xlane.xlu1 %389 }
 0x1b6   : > { %v2724_v7 = vmul.f32 0.015625, %v390_v31  ;;  %v483_v33 = vmul.f32 %v2155_v30, %v459_v28  ;;  %v441_v28 = vmul.f32 %v2697_v29, %v2697_v29 }
 0x1b8   : > { %v494_v34 = vmul.f32 %v2724_v7, %v2507_v9  ;;  %v2728_v36 = vmul.f32 %v513_v26, %v483_v33  ;;  %v449_v30 = vsub.f32 %v433_v25, %v441_v28 }
 0x1b9   : > { %v412_v11 = vpop.xlane.xlu1 %411 }
 0x1ba   : > { %572 = vperm.xlu0 %2149, %v494_v34   ;;  %v432_v2 = vmul.f32 0.015625, %v412_v11 }
 0x1bc   : > { %v448_v26 = vsub.f32 %v432_v2, %v440_v8 }
 0x1bd   : > { %v418_v12 = vpop.xlane.xlu1 %417 }
 0x1be   : > { %2151 = vset.pattern.permute.xlu0 %v2314_v19  ;;  %v688_v19 = vsel %vm205_vm0, %v679_v45, 0  ;;  %v434_v49 = vmul.f32 0.015625, %v418_v12  ;;  %v464_v31 = vadd.f32 1e-05, %v448_v26 }
 0x1bf   : > { %v2739_v23 = vand.u32 4294901760, %v688_v19 }
 0x1c0   : > { %v450_v10 = vsub.f32 %v434_v49, %v442_v52  ;;  %v456_v49 = vsub.f32 %v2595_v38, %v2693_v54 }
 0x1c1   : > { %v424_v39 = vpop.xlane.xlu1 %423  ;;  %v2742_v50 = vsub.f32 %v688_v19, %v2739_v23 }
 0x1c2   : > { %v436_v47 = vmul.f32 0.015625, %v424_v39  ;;  %v466_v55 = vadd.f32 1e-05, %v450_v10  ;;  %v465_v39 = vadd.f32 1e-05, %v449_v30 }
 0x1c3   : > { %v786_v51 = vand.u32 4294901760, %v2742_v50 }
 0x1c4   : > { %v452_v15 = vsub.f32 %v436_v47, %v444_v40 }
 0x1c5   : > { %v787_v17 = vsub.f32 %v2742_v50, %v786_v51  ;;  %1872 = vmatprep.mubr.f32.mxu0 %v786_v51 }
 0x1c6   : > { %v468_v24 = vadd.f32 1e-05, %v452_v15 }
 0x1c7   : > { %v788_v53 = vand.u32 4294901760, %v787_v17 }
 0x1c8   : > { %2156 = vrsqrt.f32 %v468_v24  ;;  %v455_v24 = vsub.f32 %v2589_v32, %v2689_v5  ;;  %v437_v5 = vmul.f32 0.015625, %v427_v56 }
 0x1c9   : > { %1788 = vmatprep.mubr.f32.mxu1 %v788_v53  ;;  %2158 = vrsqrt.f32 %v466_v55  ;;  %v457_v55 = vsub.f32 %v2615_v57, %v2697_v29 }
 0x1ca   : > { %2160 = vrsqrt.f32 %v463_v22 }
 0x1cb   : > { %2162 = vrsqrt.f32 %v464_v31 }
 0x1cc   : > { %2164 = vrsqrt.f32 %v465_v39 }
 0x1d2   : > { %v2157_v43 = vpop.eup %2156 }
 0x1d3   : > { %v484_v9 = vmul.f32 %v2157_v43, %v460_v42  ;;  %v2159_v3 = vpop.eup %2158 }
 0x1d4   : > { %v482_v13 = vmul.f32 %v2159_v3, %v458_v21  ;;  %v2161_v15 = vpop.eup %2160  ;;  %v453_v3 = vsub.f32 %v437_v5, %v445_v58 }
 0x1d5   : > { %v532_v44 = vmul.f32 %v517_v27, %v484_v9  ;;  %v597_v27 = vpop.permute.xlu1 %596  ;;  %v479_v45 = vmul.f32 %v2161_v15, %v455_v24 }
 0x1d6   : > { %v530_v34 = vmul.f32 %v2714_v0, %v482_v13  ;;  %v2163_v0 = vpop.eup %2162  ;;  %v469_v25 = vadd.f32 1e-05, %v453_v3 }
 0x1d7   : > { %v527_v51 = vmul.f32 %v2710_v63, %v479_v45  ;;  %v480_v10 = vmul.f32 %v2163_v0, %v456_v49  ;;  %v2165_v17 = vpop.eup %2164 }
 0x1d8   : > { %v481_v41 = vmul.f32 %v2165_v17, %v457_v55 }
 0x1d9   : > { %v528_v54 = vmul.f32 %v2701_v59, %v480_v10 }
 0x1da   : > { %v529_v29 = vmul.f32 %v2708_v35, %v481_v41 }
 0x1dc   : > { %v553_v33 = vpop.permute.xlu0 %552 }
 0x1dd   : > { %v578_v12 = vadd.f32 %v553_v33, %v530_v34 }
 0x1df   : > { %v618_v46 = vadd.f32 %v597_v27, %v578_v12 }
 0x1e1   : > { %v1664_v42 = vmul.f32 -1.442695, %v618_v46 }
 0x1e3   : > { %2166 = vpow2.f32 %v1664_v42 }
 0x1ea   : > { %v563_v16 = vpop.permute.xlu0 %562 }
 0x1eb   : > { %v580_v43 = vadd.f32 %v563_v16, %v532_v44 }
 0x1ed   : > { %v2167_v21 = vpop.eup %2166 }
 0x1ee   : > { %v650_v27 = vadd.f32 1.0, %v2167_v21 }
 0x1f6   : > { %v430_v11 = vpop.xlane.xlu1 %429 }
 0x1f7   : > { %v438_v39 = vmul.f32 0.015625, %v430_v11 }
 0x1fa   : > { %v2761_v40 = vpop.permute.xlu1 %520 }
 0x1fe   : > { %v2763_v47 = vpop.permute.xlu1 %524 }
 0x202   : > { %v605_v9 = vpop.permute.xlu1 %604 }
 0x203   : > { %v620_v19 = vadd.f32 %v605_v9, %v580_v43 }
 0x205   : > { %v1666_v52 = vmul.f32 -1.442695, %v620_v19 }
 0x207   : > { %v538_v53 = vpop.permute.xlu1 %537  ;;  %2168 = vpow2.f32 %v1666_v52 }
 0x208   : > { %v575_v44 = vadd.f32 %v538_v53, %v527_v51 }
 0x20a   : > { %v615_v6 = vadd.f32 %v2718_v4, %v575_v44 }
 0x20b   : > { %v543_v2 = vpop.permute.xlu1 %542 }
 0x20c   : > { %v1661_v63 = vmul.f32 -1.442695, %v615_v6  ;;  %v576_v8 = vadd.f32 %v543_v2, %v528_v54 }
 0x20e   : > { %2170 = vpow2.f32 %v1661_v63  ;;  %v616_v22 = vadd.f32 %v2721_v18, %v576_v8 }
 0x20f   : > { %v548_v56 = vpop.permute.xlu1 %547 }
 0x210   : > { %v1662_v26 = vmul.f32 -1.442695, %v616_v22  ;;  %v577_v13 = vadd.f32 %v548_v56, %v529_v29 }
 0x211   : > { %v2169_v28 = vpop.eup %2168 }
 0x212   : > { %2172 = vpow2.f32 %v1662_v26  ;;  %v617_v59 = vadd.f32 %v2748_v60, %v577_v13  ;;  %v652_v33 = vadd.f32 1.0, %v2169_v28  ;;  %v446_v60 = vmul.f32 %v2724_v7, %v2724_v7 }
 0x213   : > { %v558_v4 = vpop.permute.xlu1 %557  ;;  %2174 = vrsqrt.f32 %v469_v25  ;;  %v462_v26 = vsub.f32 %v2659_v37, %v2724_v7 }
 0x214   : > { %v1663_v30 = vmul.f32 -1.442695, %v617_v59  ;;  %v579_v31 = vadd.f32 %v558_v4, %v2728_v36  ;;  %2176 = vrcp.f32 %v650_v27  ;;  %v454_v24 = vsub.f32 %v438_v39, %v446_v60 }
 0x216   : > { %2178 = vpow2.f32 %v1663_v30  ;;  %v619_v18 = vadd.f32 %v2754_v20, %v579_v31  ;;  %v461_v20 = vsub.f32 %v2624_v1, %v2705_v62  ;;  %v470_v45 = vadd.f32 1e-05, %v454_v24 }
 0x217   : > { %2180 = vrcp.f32 %v652_v33  ;;  %v568_v42 = vpop.permute.xlu1 %567 }
 0x218   : > { %v2171_v35 = vpop.eup %2170  ;;  %v1665_v34 = vmul.f32 -1.442695, %v619_v18 }
 0x219   : > { %v647_v12 = vadd.f32 1.0, %v2171_v35 }
 0x21a   : > { %2182 = vpow2.f32 %v1665_v34 }
 0x21b   : > { %2184 = vrcp.f32 %v647_v12 }
 0x21c   : > { %v2173_v46 = vpop.eup %2172  ;;  %v609_v17 = vpop.permute.xlu1 %608 }
 0x21d   : > { %v648_v16 = vadd.f32 1.0, %v2173_v46  ;;  %v2175_v15 = vpop.eup %2174 }
 0x21e   : > { %v2177_v36 = vpop.eup %2176  ;;  %v485_v0 = vmul.f32 %v2175_v15, %v461_v20 }
 0x21f   : > { %2186 = vrcp.f32 %v648_v16  ;;  %v674_v19 = vmul.f32 %v2177_v36, %v2602_v48 }
 0x220   : > { %v2179_v43 = vpop.eup %2178  ;;  %v533_v52 = vmul.f32 %v2761_v40, %v485_v0 }
 0x221   : > { %v649_v9 = vadd.f32 1.0, %v2179_v43  ;;  %v2181_v11 = vpop.eup %2180  ;;  %v721_v5 = vand.u32 4294901760, %v674_v19 }
 0x222   : > { %v581_v55 = vadd.f32 %v568_v42, %v533_v52  ;;  %v676_v62 = vmul.f32 %v2181_v11, %v2626_v14 }
 0x223   : > { %2188 = vrcp.f32 %v649_v9  ;;  %v887_v41 = vsub.f32 %v674_v19, %v721_v5 }
 0x224   : > { %v2183_v49 = vpop.eup %2182  ;;  %2190 = vrsqrt.f32 %v470_v45  ;;  %v621_v44 = vadd.f32 %v609_v17, %v581_v55  ;;  %v727_v2 = vand.u32 4294901760, %v676_v62 }
 0x225   : > { %v2185_v51 = vpop.eup %2184  ;;  %v651_v10 = vadd.f32 1.0, %v2183_v49  ;;  %v888_v29 = vand.u32 4294901760, %v887_v41 }
 0x226   : > { %v671_v53 = vmul.f32 %v2185_v51, %v2589_v32  ;;  %v1667_v40 = vmul.f32 -1.442695, %v621_v44  ;;  %v901_v14 = vsub.f32 %v676_v62, %v727_v2  ;;  %v613_v51 = vpop.permute.xlu1 %612  ;;  %v680_v44 = vld [vmem:[%s3059_s2 + $0x8] sm:$0xff] }
 0x227   : > { %2192 = vrcp.f32 %v651_v10  ;;  %v889_v18 = vsub.f32 %v887_v41, %v888_v29 }
 0x228   : > { %v712_v58 = vand.u32 4294901760, %v671_v53  ;;  %2194 = vpow2.f32 %v1667_v40  ;;  %v902_v34 = vand.u32 4294901760, %v901_v14 }
 0x229   : > { %v2187_v6 = vpop.eup %2186  ;;  %v890_v42 = vand.u32 4294901760, %v889_v18 }
 0x22a   : > { %v672_v48 = vmul.f32 %v2187_v6, %v2595_v38  ;;  %v866_v54 = vsub.f32 %v671_v53, %v712_v58  ;;  %v903_v9 = vsub.f32 %v901_v14, %v902_v34 }
 0x22c   : > { %v715_v3 = vand.u32 4294901760, %v672_v48  ;;  %v867_v8 = vand.u32 4294901760, %v866_v54  ;;  %v904_v53 = vand.u32 4294901760, %v903_v9 }
 0x22d   : > { %v2189_v63 = vpop.eup %2188 }
 0x22e   : > { %v673_v21 = vmul.f32 %v2189_v63, %v2615_v57  ;;  %v2791_v32 = vpack.c.bf16 %v715_v3, %v712_v58  ;;  %v873_v22 = vsub.f32 %v672_v48, %v715_v3  ;;  %v2191_v56 = vpop.eup %2190  ;;  %v868_v57 = vsub.f32 %v866_v54, %v867_v8  ;;  %v681_v48 = vld [vmem:[%s3059_s2 + $0x10] sm:$0xff] }
 0x22f   : > { %v486_v30 = vmul.f32 %v2191_v56, %v462_v26  ;;  %v691_v58 = vsel %vm205_vm0, %v680_v44, 0  ;;  %v694_v3 = vsel %vm205_vm0, %v681_v48, 0  ;;  %v685_v26 = vld [vmem:[%s3059_s2 + $0x30] sm:$0xff] }
 0x230   : > { %1941 = vmatprep.subr.bf16.mxu1 %v2791_v32  ;;  %1989 = vmatprep.subr.bf16.mxu0 %v2791_v32  ;;  %v718_v38 = vand.u32 4294901760, %v673_v21  ;;  %v874_v13 = vand.u32 4294901760, %v873_v22  ;;  %v2799_v27 = vpack.c.bf16 %v873_v22, %v866_v54  ;;  %v2841_v40 = vand.u32 4294901760, %v691_v58 }
 0x231   : > { %v2193_v25 = vpop.eup %2192  ;;  %1943 = vmatpush3.bf16.msra.mxu1 %v2791_v32  ;;  %1991 = vmatpush3.bf16.msra.mxu0 %v2791_v32  ;;  %v534_v24 = vmul.f32 %v2763_v47, %v486_v30  ;;  %v2855_v56 = vand.u32 4294901760, %v694_v3 }
 0x232   : > { %v675_v28 = vmul.f32 %v2193_v25, %v2620_v61  ;;  %v2802_v59 = vpack.c.bf16 %v721_v5, %v718_v38  ;;  %v880_v4 = vsub.f32 %v673_v21, %v718_v38  ;;  %v875_v31 = vsub.f32 %v873_v22, %v874_v13  ;;  %v2195_v11 = vpop.eup %2194  ;;  %v683_v21 = vld [vmem:[%s3059_s2 + $0x20] sm:$0xff]  ;;  %v684_v22 = vld [vmem:[%s3059_s2 + $0x28] sm:$0xff] }
 0x233   : > { %v2804_v33 = vpack.c.bf16 %v874_v13, %v867_v8  ;;  %v869_v61 = vand.u32 4294901760, %v868_v57  ;;  %v653_v55 = vadd.f32 1.0, %v2195_v11  ;;  %v703_v25 = vsel %vm205_vm0, %v684_v22, 0 }
 0x234   : > { %1945 = vmatprep.subr.bf16.mxu1 %v2802_v59  ;;  %1993 = vmatprep.subr.bf16.mxu0 %v2802_v59  ;;  %v724_v7 = vand.u32 4294901760, %v675_v28  ;;  %v881_v35 = vand.u32 4294901760, %v880_v4  ;;  %v2808_v12 = vpack.c.bf16 %v887_v41, %v880_v4  ;;  %v876_v39 = vand.u32 4294901760, %v875_v31 }
 0x235   : > { %1947 = vmatpush3.bf16.msra.mxu1 %v2802_v59  ;;  %1995 = vmatpush3.bf16.msra.mxu0 %v2802_v59  ;;  %v2866_v13 = vsub.f32 %v694_v3, %v2855_v56  ;;  %v2876_v31 = vand.u32 4294901760, %v703_v25 }
 0x236   : > { %v2812_v46 = vpack.c.bf16 %v727_v2, %v724_v7  ;;  %v882_v60 = vsub.f32 %v880_v4, %v881_v35  ;;  %v2814_v16 = vpack.c.bf16 %v888_v29, %v881_v35  ;;  %v894_v15 = vsub.f32 %v675_v28, %v724_v7  ;;  %v682_v2 = vld [vmem:[%s3059_s2 + $0x18] sm:$0xff] }
 0x237   : > { %v2817_v36 = vpack.c.bf16 %v876_v39, %v869_v61  ;;  %v697_v8 = vsel %vm205_vm0, %v682_v2, 0  ;;  %v2853_v29 = vsub.f32 %v691_v58, %v2841_v40  ;;  %v686_v28 = vld [vmem:[%s3059_s2 + $0x38] sm:$0xff]  ;;  %v706_v7 = vsel %vm205_vm0, %v685_v26, 0 }
 0x238   : > { %1949 = vmatprep.subr.bf16.mxu1 %v2812_v46  ;;  %1997 = vmatprep.subr.bf16.mxu0 %v2812_v46  ;;  %v883_v43 = vand.u32 4294901760, %v882_v60  ;;  %v895_v20 = vand.u32 4294901760, %v894_v15  ;;  %v2821_v45 = vpack.c.bf16 %v901_v14, %v894_v15  ;;  %v2857_v38 = vand.u32 4294901760, %v697_v8 }
 0x239   : > { %v573_v0 = vpop.permute.xlu0 %572  ;;  %1951 = vmatpush3.bf16.msra.mxu1 %v2812_v46  ;;  %1999 = vmatpush3.bf16.msra.mxu0 %v2812_v46  ;;  %v796_v57 = vand.u32 4294901760, %v2853_v29  ;;  %v806_v60 = vand.u32 4294901760, %v2866_v13 }
 0x23a   : > { %v582_v19 = vadd.f32 %v573_v0, %v534_v24  ;;  %v2825_v47 = vpack.c.bf16 %v890_v42, %v883_v43  ;;  %v896_v49 = vsub.f32 %v894_v15, %v895_v20  ;;  %v2827_v52 = vpack.c.bf16 %v902_v34, %v895_v20 }
 0x23b   : > { %v2872_v4 = vsub.f32 %v697_v8, %v2857_v38  ;;  %v709_v34 = vsel %vm205_vm0, %v686_v28, 0  ;;  %v797_v39 = vsub.f32 %v2853_v29, %v796_v57  ;;  %v2888_v42 = vsub.f32 %v703_v25, %v2876_v31 }
 0x23c   : > { %v622_v10 = vadd.f32 %v613_v51, %v582_v19  ;;  %v897_v17 = vand.u32 4294901760, %v896_v49  ;;  %v2890_v43 = vand.u32 4294901760, %v706_v7  ;;  %v2892_v0 = vand.u32 4294901760, %v709_v34 }
 0x23d   : > { %v816_v15 = vand.u32 4294901760, %v2872_v4  ;;  %v807_v19 = vsub.f32 %v2866_v13, %v806_v60 }
 0x23e   : > { %v1668_v5 = vmul.f32 -1.442695, %v622_v10  ;;  %v2829_v62 = vpack.c.bf16 %v904_v53, %v897_v17  ;;  %v836_v17 = vand.u32 4294901760, %v2888_v42  ;;  %v2901_v53 = vsub.f32 %v706_v7, %v2890_v43 }
 0x23f   : > { %v817_v51 = vsub.f32 %v2872_v4, %v816_v15  ;;  %v2906_v44 = vsub.f32 %v709_v34, %v2892_v0 }
 0x240   : > { %2196 = vpow2.f32 %v1668_v5  ;;  %v846_v3 = vand.u32 4294901760, %v2901_v53 }
 0x241   : > { %2198 = vrcp.f32 %v653_v55  ;;  %v856_v22 = vand.u32 4294901760, %v2906_v44 }
 0x242   : > { %v847_v25 = vsub.f32 %v2901_v53, %v846_v3 }
 0x24a   : > { %v2197_v6 = vpop.eup %2196 }
 0x24b   : > { %v2199_v54 = vpop.eup %2198  ;;  %v654_v41 = vadd.f32 1.0, %v2197_v6 }
 0x24c   : > { %v677_v63 = vmul.f32 %v2199_v54, %v2624_v1  ;;  %v700_v1 = vsel %vm205_vm0, %v683_v21, 0  ;;  %v808_v54 = vand.u32 4294901760, %v807_v19 }
 0x24d   : > { %2200 = vrcp.f32 %v654_v41  ;;  %v2874_v30 = vand.u32 4294901760, %v700_v1  ;;  %v818_v41 = vand.u32 4294901760, %v817_v51 }
 0x24e   : > { %v730_v14 = vand.u32 4294901760, %v677_v63 }
 0x24f   : > { %v2885_v24 = vsub.f32 %v700_v1, %v2874_v30 }
 0x250   : > { %v908_v18 = vsub.f32 %v677_v63, %v730_v14  ;;  %v837_v63 = vsub.f32 %v2888_v42, %v836_v17 }
 0x251   : > { %v826_v10 = vand.u32 4294901760, %v2885_v24 }
 0x252   : > { %v909_v9 = vand.u32 4294901760, %v908_v18  ;;  %v838_v26 = vand.u32 4294901760, %v837_v63 }
 0x253   : > { %v827_v2 = vsub.f32 %v2885_v24, %v826_v10 }
 0x254   : > { %v910_v55 = vsub.f32 %v908_v18, %v909_v9 }
 0x255   : > { %v828_v1 = vand.u32 4294901760, %v827_v2 }
 0x256   : > { %v911_v8 = vand.u32 4294901760, %v910_v55 }
 0x257   : > { %v2201_v35 = vpop.eup %2200 }
 0x258   : > { %v678_v61 = vmul.f32 %v2201_v35, %v2659_v37  ;;  %v798_v37 = vand.u32 4294901760, %v797_v39  ;;  %v2206_v39 = vld [vmem:[%s2449_s11 + $0x28] sm:$0xff] }
 0x25a   : > { %v733_v20 = vand.u32 4294901760, %v678_v61 }
 0x25c   : > { %v2894_v11 = vpack.c.bf16 %v733_v20, %v730_v14  ;;  %v915_v49 = vsub.f32 %v678_v61, %v733_v20 }
 0x25e   : > { %1953 = vmatprep.subr.bf16.mxu1 %v2894_v11  ;;  %2001 = vmatprep.subr.bf16.mxu0 %v2894_v11  ;;  %v916_v5 = vand.u32 4294901760, %v915_v49  ;;  %v2908_v58 = vpack.c.bf16 %v915_v49, %v908_v18 }
 0x25f   : > { %1955 = vmatpush3.bf16.msra.mxu1 %v2894_v11  ;;  %2003 = vmatpush3.bf16.msra.mxu0 %v2894_v11 }
 0x260   : > { %1957 = vmatprep.subr.bf16.mxu1 %v2817_v36  ;;  %2005 = vmatprep.subr.bf16.mxu0 %v2804_v33  ;;  %v917_v6 = vsub.f32 %v915_v49, %v916_v5  ;;  %v2016_v48 = vpack.c.bf16 %v916_v5, %v909_v9  ;;  %v2209_v49 = vld [vmem:[%s2449_s11 + $0x30] sm:$0xff] }
 0x262   : > { %1789 = vmatmul.mubr.f32.vlgmr.msra.gmra.mrb[0].mxu1 %v798_v37  ;;  %1873 = vmatmul.mubr.f32.vlgmr.msra.gmra.mrb[0].mxu0 %v796_v57  ;;  %v918_v21 = vand.u32 4294901760, %v917_v6  ;;  %v857_v57 = vsub.f32 %v2906_v44, %v856_v22  ;;  %v2208_v37 = vld [vmem:[%s2449_s11 + $0x38] sm:$0xff] }
 0x263   : > { %1959 = vmatpush3.bf16.msra.mxu1 %v2817_v36  ;;  %2007 = vmatpush3.bf16.msra.mxu0 %v2804_v33  ;;  %v848_v33 = vand.u32 4294901760, %v847_v25 }
 0x264   : > { %1961 = vmatprep.subr.bf16.mxu1 %v2825_v47  ;;  %2009 = vmatprep.subr.bf16.mxu0 %v2814_v16  ;;  %v1968_v14 = vpack.c.bf16 %v918_v21, %v911_v8  ;;  %v858_v36 = vand.u32 4294901760, %v857_v57 }
 0x265   : > { %1791 = vmatprep.mubr.f32.mxu1 %v808_v54  ;;  %1875 = vmatprep.mubr.f32.mxu0 %v806_v60 }
 0x266   : > { %1792 = vmatmul.mubr.f32.gmra.mrb[2].mxu1 %v818_v41  ;;  %1876 = vmatmul.mubr.f32.gmra.mrb[2].mxu0 %v816_v15  ;;  %v2207_v15 = vld [vmem:[%s2449_s11 + $0x20] sm:$0xff] }
 0x267   : > { %1963 = vmatpush3.bf16.msra.mxu1 %v2825_v47  ;;  %2011 = vmatpush3.bf16.msra.mxu0 %v2814_v16 }
 0x268   : > { %1965 = vmatprep.subr.bf16.mxu1 %v2829_v62  ;;  %2013 = vmatprep.subr.bf16.mxu0 %v2827_v52 }
 0x269   : > { %1794 = vmatprep.mubr.f32.mxu1 %v828_v1  ;;  %1878 = vmatprep.mubr.f32.mxu0 %v826_v10 }
 0x26a   : > { %1795 = vmatmul.mubr.f32.gmra.mrb[4].mxu1 %v838_v26  ;;  %1879 = vmatmul.mubr.f32.gmra.mrb[4].mxu0 %v836_v17 }
 0x26b   : > { %1967 = vmatpush3.bf16.msra.mxu1 %v2829_v62  ;;  %2015 = vmatpush3.bf16.msra.mxu0 %v2827_v52 }
 0x26c   : > { %1969 = vmatprep.subr.bf16.mxu1 %v1968_v14  ;;  %2017 = vmatprep.subr.bf16.mxu0 %v2016_v48 }
 0x26d   : > { %1797 = vmatprep.mubr.f32.mxu1 %v848_v33  ;;  %1881 = vmatprep.mubr.f32.mxu0 %v846_v3 }
 0x26e   : > { %1798 = vmatmul.mubr.f32.gmra.mrb[6].mxu1 %v858_v36  ;;  %1882 = vmatmul.mubr.f32.gmra.mrb[6].mxu0 %v856_v22 }
 0x26f   : > { %1971 = vmatpush3.bf16.msra.mxu1 %v1968_v14  ;;  %2019 = vmatpush3.bf16.msra.mxu0 %v2016_v48 }
 0x270   : > { %1973 = vmatprep.subr.bf16.mxu1 %v2799_v27  ;;  %2021 = vmatprep.subr.bf16.mxu0 %v2791_v32 }
 0x271   : > { %1816 = vmatprep.mubr.f32.mxu1 %v2739_v23  ;;  %1900 = vmatprep.mubr.f32.mxu0 %v2739_v23 }
 0x272   : > { %1817 = vmatmul.mubr.f32.vlgmr.msra.gmra.mrb[0].mxu1 %v2841_v40  ;;  %1901 = vmatmul.mubr.f32.vlgmr.msra.gmra.mrb[0].mxu0 %v2841_v40 }
 0x273   : > { %1975 = vmatpush3.bf16.msra.mxu1 %v2799_v27  ;;  %2023 = vmatpush3.bf16.msra.mxu0 %v2791_v32 }
 0x274   : > { %1977 = vmatprep.subr.bf16.mxu1 %v2808_v12  ;;  %2025 = vmatprep.subr.bf16.mxu0 %v2802_v59 }
 0x275   : > { %1819 = vmatprep.mubr.f32.mxu1 %v2855_v56  ;;  %1903 = vmatprep.mubr.f32.mxu0 %v2855_v56 }
 0x276   : > { %1820 = vmatmul.mubr.f32.gmra.mrb[2].mxu1 %v2857_v38  ;;  %1904 = vmatmul.mubr.f32.gmra.mrb[2].mxu0 %v2857_v38 }
 0x277   : > { %1979 = vmatpush3.bf16.msra.mxu1 %v2808_v12  ;;  %2027 = vmatpush3.bf16.msra.mxu0 %v2802_v59 }
 0x278   : > { %1981 = vmatprep.subr.bf16.mxu1 %v2821_v45  ;;  %2029 = vmatprep.subr.bf16.mxu0 %v2812_v46 }
 0x279   : > { %1822 = vmatprep.mubr.f32.mxu1 %v2874_v30  ;;  %1906 = vmatprep.mubr.f32.mxu0 %v2874_v30 }
 0x27a   : > { %1823 = vmatmul.mubr.f32.gmra.mrb[4].mxu1 %v2876_v31  ;;  %1907 = vmatmul.mubr.f32.gmra.mrb[4].mxu0 %v2876_v31 }
 0x27b   : > { %1983 = vmatpush3.bf16.msra.mxu1 %v2821_v45  ;;  %2031 = vmatpush3.bf16.msra.mxu0 %v2812_v46  ;;  %v2202_v46 = vld [vmem:[%s2449_s11 + $0x8] sm:$0xff]  ;;  %v2203_v45 = vld [vmem:[%s2449_s11] sm:$0xff] }
 0x27c   : > { %1985 = vmatprep.subr.bf16.mxu1 %v2908_v58  ;;  %2033 = vmatprep.subr.bf16.mxu0 %v2894_v11 }
 0x27d   : > { %1825 = vmatprep.mubr.f32.mxu1 %v2890_v43  ;;  %1909 = vmatprep.mubr.f32.mxu0 %v2890_v43 }
 0x27e   : > { %1826 = vmatmul.mubr.f32.gmra.mrb[6].mxu1 %v2892_v0  ;;  %1910 = vmatmul.mubr.f32.gmra.mrb[6].mxu0 %v2892_v0 }
 0x27f   : > { %1987 = vmatpush3.bf16.msra.mxu1 %v2908_v58  ;;  %2035 = vmatpush3.bf16.msra.mxu0 %v2894_v11 }
 0x280   : > { %1844 = vmatprep.mubr.f32.mxu1 %v2742_v50  ;;  %1928 = vmatprep.mubr.f32.mxu0 %v2739_v23 }
 0x282   : > { %1845 = vmatmul.mubr.f32.vlgmr.msra.gmra.mrb[0].mxu1 %v2853_v29  ;;  %1929 = vmatmul.mubr.f32.vlgmr.msra.gmra.mrb[0].mxu0 %v2841_v40 }
 0x283   : > { %1847 = vmatprep.mubr.f32.mxu1 %v2866_v13  ;;  %1931 = vmatprep.mubr.f32.mxu0 %v2855_v56  ;;  %v2204_v13 = vld [vmem:[%s2449_s11 + $0x18] sm:$0xff] }
 0x286   : > { %1848 = vmatmul.mubr.f32.gmra.mrb[2].mxu1 %v2872_v4  ;;  %1932 = vmatmul.mubr.f32.gmra.mrb[2].mxu0 %v2857_v38  ;;  %v2205_v4 = vld [vmem:[%s2449_s11 + $0x10] sm:$0xff] }
 0x287   : > { %1850 = vmatprep.mubr.f32.mxu1 %v2885_v24  ;;  %1934 = vmatprep.mubr.f32.mxu0 %v2874_v30 }
 0x28a   : > { %1851 = vmatmul.mubr.f32.gmra.mrb[4].mxu1 %v2888_v42  ;;  %1935 = vmatmul.mubr.f32.gmra.mrb[4].mxu0 %v2876_v31 }
 0x28b   : > { %1853 = vmatprep.mubr.f32.mxu1 %v2901_v53  ;;  %1937 = vmatprep.mubr.f32.mxu0 %v2890_v43 }
 0x28e   : > { %1854 = vmatmul.mubr.f32.gmra.mrb[6].mxu1 %v2906_v44  ;;  %1938 = vmatmul.mubr.f32.gmra.mrb[6].mxu0 %v2892_v0 }
 0x355   : > { %v1846_v23 = vpop.f32.mrb[0].mxu1  ;;  %v1930_v50 = vpop.f32.mrb[0].mxu0 }
 0x356   : > { %v2036_v32 = vadd.f32 %v1930_v50, %v1846_v23  ;;  %v1101_v27 = vpop.f32.mrb[1].mxu1  ;;  %v1503_v59 = vpop.f32.mrb[1].mxu0 }
 0x357   : > { %v2037_v12 = vadd.f32 %v1503_v59, %v1101_v27 }
 0x358   : > { %v1550_v16 = vadd.f32 %v2202_v46, %v2036_v32 }
 0x359   : > { %v1549_v47 = vadd.f32 %v2203_v45, %v2037_v12  ;;  %v1849_v52 = vpop.f32.mrb[2].mxu1  ;;  %v1933_v62 = vpop.f32.mrb[2].mxu0 }
 0x35a   : > { %1558 = vst.msk [vmem:[%s2982_s7 + $0x8] sm:$0xff] %vm205_vm0, %v1550_v16  ;;  %v2038_v40 = vadd.f32 %v1933_v62, %v1849_v52  ;;  %v1115_v29 = vpop.f32.mrb[3].mxu1  ;;  %v1515_v56 = vpop.f32.mrb[3].mxu0 }
 0x35b   : > { %1557 = vst.msk [vmem:[%s2982_s7] sm:$0xff] %vm205_vm0, %v1549_v47  ;;  %v2039_v38 = vadd.f32 %v1515_v56, %v1115_v29 }
 0x35c   : > { %v1552_v28 = vadd.f32 %v2204_v13, %v2038_v40 }
 0x35d   : > { %v1551_v30 = vadd.f32 %v2205_v4, %v2039_v38  ;;  %v1852_v31 = vpop.f32.mrb[4].mxu1  ;;  %v1936_v18 = vpop.f32.mrb[4].mxu0 }
 0x35e   : > { %1560 = vst.msk [vmem:[%s2982_s7 + $0x18] sm:$0xff] %vm205_vm0, %v1552_v28  ;;  %v2040_v7 = vadd.f32 %v1936_v18, %v1852_v31  ;;  %v1129_v35 = vpop.f32.mrb[5].mxu1  ;;  %v1527_v34 = vpop.f32.mrb[5].mxu0 }
 0x35f   : > { %1559 = vst.msk [vmem:[%s2982_s7 + $0x10] sm:$0xff] %vm205_vm0, %v1551_v30  ;;  %v2041_v61 = vadd.f32 %v1527_v34, %v1129_v35 }
 0x360   : > { %v1554_v60 = vadd.f32 %v2206_v39, %v2040_v7 }
 0x361   : > { %v1553_v24 = vadd.f32 %v2207_v15, %v2041_v61  ;;  %v1855_v42 = vpop.f32.mrb[6].mxu1  ;;  %v1939_v43 = vpop.f32.mrb[6].mxu0 }
 0x362   : > { %1562 = vst.msk [vmem:[%s2982_s7 + $0x28] sm:$0xff] %vm205_vm0, %v1554_v60  ;;  %v2042_v20 = vadd.f32 %v1939_v43, %v1855_v42  ;;  %v1143_v9 = vpop.f32.mrb[7].mxu1  ;;  %v1539_v0 = vpop.f32.mrb[7].mxu0 }
 0x363   : > { %1561 = vst.msk [vmem:[%s2982_s7 + $0x20] sm:$0xff] %vm205_vm0, %v1553_v24  ;;  %v2043_v11 = vadd.f32 %v1539_v0, %v1143_v9 }
 0x364   : > { %v1556_v19 = vadd.f32 %v2208_v37, %v2042_v20 }
 0x365   : > { %v1555_v51 = vadd.f32 %v2209_v49, %v2043_v11 }
 0x366   : > { %1564 = vst.msk [vmem:[%s2982_s7 + $0x38] sm:$0xff] %vm205_vm0, %v1556_v19 }
 0x367   : > { %1563 = vst.msk [vmem:[%s2982_s7 + $0x30] sm:$0xff] %vm205_vm0, %v1555_v51 }
 0x368   : > { %2253 = shalt.err (!%p2250_p2)
}
 0x369   : > { %s2254_s11 = scalar_lea.hbm %s3006_s19, 1024  ;;  %s2258_s30 = scalar_lea.hbm %s3060_s3, 2048 }
 0x36a   : > { %p2255_p4 = scmp.ne.s32.totalorder %s3006_s19, %s2254_s11  ;;  %p2259_p9 = scmp.lt.u32.totalorder %s3006_s19, %s3060_s3 }
 0x36b   : > { %p2260_p1 = scmp.lt.u32.totalorder %s2258_s30, %s2254_s11  ;;  %p2262_p6 = scmp.lt.u32.totalorder %s2254_s11, %s3006_s19 }
 0x36c   : > { %p2256_p5 = pnand %p2255_p4, %p3067_p11 }
 0x36d   : > { %p2261_p3 = por %p2260_p1, %p2259_p9 }
 0x36e   : > { %p2257_p7 = pneg %p2256_p5 }
 0x36f   : > { %p2263_p12 = por %p2262_p6, %p2261_p3 }
 0x371   : > { %p2264_p13 = pnand %p2263_p12, %p2257_p7 }
 0x373   : > { %2267 = shalt.err (!%p2264_p13)
}
 0x374   : > { %s2317_s6 = smov 128   ;;  %s2318_s7 = smov 8  }
 0x375   : > { %2078 = dma.vmem_to_hbm [thread:$0]  (%p3067_p11), %s3008_s8, 1024, %s3006_s19, %s1566_s16, %s2317_s6, %s2317_s6, %s2318_s7  }
 0x376 PF: > { %s1594_s9 = sand.u32 1, %s2294_s12   ;;  %p3068_p8 = scmp.ne.s32.totalorder %s3065_s25, 0 }
 0x377   : > { %p3069_p10 = scmp.ge.s32.totalorder %s2306_s15, 2  ;;  %s1595_s23 = scalar_lea.sflag [#allocation4], %s1594_s9 }
 0x379   : > { %p2085_p0 = pnand %p3069_p10, %p3068_p8 }
 0x37b   : > { %2289 = dma.done.wait (!%p2085_p0), %s1595_s23, 1024  }
 0x37c   : > { %2291 = vsyncadd (!%p2085_p0), %s1595_s23, 4294966272  ;;  %p16_p2 = scmp.ge.s32.totalorder %s2364_s18, 4   ;;  %s3070_s12 = smov %s2298_s13 }
 0x37d   : > { %s3071_s13 = smov %s2302_s14  ;;  %s3072_s14 = smov %s2376_s21 }
 0x37e   : > { %s3073_s15 = smov %s2364_s18  ;;  %18 = sbr.rel (!%p16_p2) target bundleno = 5 (0x5), region = 77 }
 0x385   :  { %1600 = vsyncpa [#allocation3], 1 }
 0x386   :  { %1602 = vsyncpa [#allocation3 + $0x1], 1 }
 0x387   :  { %1603 = vsyncpa [#allocation4], 1 }
 0x388   :  { %1605 = vsyncpa [#allocation4 + $0x1], 1 }

</bundles_post_ra>
